<compile_context>
chip_gen: v7x
topology: tpu7x:2x2x1
jax: 0.10.0
libtpu: 0.0.40
codegen_flags: <defaults>
</compile_context>

<pallas_src>
import functools
from typing import NamedTuple

import jax
import jax.numpy as jnp
from jax import lax
from jax.experimental import pallas as pl
from jax.experimental.pallas import tpu as pltpu

EPS = 1e-4          # module default eps=0.0001
NEG_SLOPE = 0.01    # F.leaky_relu default negative_slope
_LANE = 128


def _round_up(v, m):
    return ((v + m - 1) // m) * m


def _pick_tile(padded, preferred, min_tiles=1):
    """Largest multiple of 128 that divides `padded`, is <= preferred, and (when
    possible) leaves at least `min_tiles` tiles along the axis."""
    preferred = max(preferred, _LANE)
    divisors = [m * _LANE for m in range(1, padded // _LANE + 1)
                if padded % (m * _LANE) == 0 and m * _LANE <= preferred]
    good = [t for t in divisors if padded // t >= min_tiles]
    if good:
        return max(good)
    return max(divisors)  # 128 always divides `padded`


class PreparedLinearBN(NamedTuple):
    weight: jax.Array      # [k_pad, n_pad] = W^T, zero-padded, in compute dtype
    in_features: int
    out_features: int
    tk: int
    tn: int


def prepare_linear_bn_weight(weight, *, tn_pref=256, tk_pref=2048,
                             compute_dtype=jnp.bfloat16):
    """One-time weight prep (do at module init, NOT per call).

    weight: PyTorch-layout [out_features, in_features].
    Returns the transposed/padded/cast weight plus the tiling metadata.
    """
    out_f, in_f = weight.shape
    k_pad = _round_up(in_f, _LANE)
    n_pad = _round_up(out_f, _LANE)
    tk = _pick_tile(k_pad, tk_pref)
    # keep >=2 out_feature tiles when possible so v7x megacore shards the j axis
    tn = _pick_tile(n_pad, tn_pref, min_tiles=2)
    wt = weight.T.astype(compute_dtype)                       # [in, out], canonical layout
    if (k_pad, n_pad) != (in_f, out_f):
        wt = jnp.pad(wt, ((0, k_pad - in_f), (0, n_pad - out_f)))
    return PreparedLinearBN(wt, in_f, out_f, tk, tn)


def _linear_bn_lrelu_kernel(x_ref, w_ref, o_ref, *scratch, eps, neg_slope):
    # x_ref:   [B, tk]   compute dtype (bf16 by default) -> straight to MXU
    # w_ref:   [tk, tn]  compute dtype, pre-transposed -> canonical contraction
    # o_ref:   [B, tn]   output block, resident across the K grid axis
    # scratch: optional [B, tn] f32 accumulator (only when o_ref is not f32)
    acc_ref = scratch[0] if scratch else o_ref
    k = pl.program_id(1)

    @pl.when(k == 0)
    def _():
        acc_ref[...] = jnp.zeros_like(acc_ref)

    acc_ref[...] += jnp.dot(x_ref[...], w_ref[...],
                            preferred_element_type=jnp.float32)

    @pl.when(k == pl.num_programs(1) - 1)
    def _():
        y = acc_ref[...].astype(jnp.float32)                  # [B, tn]
        inv_b = 1.0 / y.shape[0]
        mean = jnp.sum(y, axis=0, keepdims=True) * inv_b
        d = y - mean
        var = jnp.sum(d * d, axis=0, keepdims=True) * inv_b   # biased, two-pass variance
        y_hat = d * lax.rsqrt(var + eps)                      # rsqrt -> EUP slot
        o_ref[...] = jnp.maximum(y_hat, neg_slope * y_hat).astype(o_ref.dtype)


def linear_bn_leakyrelu(x, prepared: PreparedLinearBN, *, eps=EPS, neg_slope=NEG_SLOPE):
    """x: [B, in_features]; prepared: output of prepare_linear_bn_weight."""
    B, in_f = x.shape
    assert in_f == prepared.in_features
    k_pad, n_pad = prepared.weight.shape
    tk, tn = prepared.tk, prepared.tn
    out_dtype = x.dtype
    compute_dtype = prepared.weight.dtype

    xp = x.astype(compute_dtype)
    if k_pad != in_f:
        # Zero padding is exact (padded K columns contribute 0 to the matmul).
        # TODO(synk): hoist this pad upstream if the layer is called repeatedly.
        xp = jnp.pad(xp, ((0, 0), (0, k_pad - in_f)))

    use_scratch = jnp.dtype(out_dtype) != jnp.dtype(jnp.float32)
    scratch_shapes = [pltpu.VMEM((B, tn), jnp.float32)] if use_scratch else []

    # VMEM budget: double-buffered x/W/out blocks (+ optional f32 accumulator).
    cb = jnp.dtype(compute_dtype).itemsize
    ob = jnp.dtype(out_dtype).itemsize
    footprint = 2 * (B * tk * cb + tk * tn * cb + B * tn * ob)
    if use_scratch:
        footprint += B * tn * 4
    vmem_limit = min(64 * 1024 * 1024, max(32 * 1024 * 1024, (footprint * 3) // 2))

    grid = (n_pad // tn, k_pad // tk)
    kernel = functools.partial(_linear_bn_lrelu_kernel, eps=float(eps),
                               neg_slope=float(neg_slope))

    out = pl.pallas_call(
        kernel,
        out_shape=jax.ShapeDtypeStruct((B, n_pad), out_dtype),
        grid_spec=pltpu.PrefetchScalarGridSpec(
            num_scalar_prefetch=0,
            grid=grid,
            in_specs=[
                # With a single K tile (the common case at these layer sizes) this block
                # index is constant -> x is DMA'd once for the whole grid.
                pl.BlockSpec((B, tk), lambda j, k: (0, k)),
                pl.BlockSpec((tk, tn), lambda j, k: (k, j)),   # pre-transposed W tile
            ],
            out_specs=pl.BlockSpec((B, tn), lambda j, k: (0, j)),
            scratch_shapes=scratch_shapes,
        ),
        compiler_params=pltpu.CompilerParams(
            dimension_semantics=("parallel", "arbitrary"),
            vmem_limit_bytes=int(vmem_limit),
        ),
    )(xp, prepared.weight)

    return out if n_pad == prepared.out_features else out[:, :prepared.out_features]


def reference(x, weight, eps=EPS, neg_slope=NEG_SLOPE):
    y = x @ weight.T
    mean = jnp.mean(y, axis=0, keepdims=True)
    var = jnp.mean((y - mean) ** 2, axis=0, keepdims=True)
    y_hat = (y - mean) / jnp.sqrt(var + eps)
    return jnp.where(y_hat >= 0, y_hat, neg_slope * y_hat)


if __name__ == "__main__":
    key = jax.random.PRNGKey(0)
    k_x, k_w, k_x2, k_w2 = jax.random.split(key, 4)

    def _q(a):  # bf16-round an f32 array (to match the kernel's streaming dtype)
        return a.astype(jnp.bfloat16).astype(jnp.float32)

    # Small shape consistent with the mnist_LeNet decoder blocks.
    batch, in_features, out_features = 8, 32, 64
    x = jax.random.normal(k_x, (batch, in_features), dtype=jnp.float32)
    bound = 1.0 / (in_features ** 0.5)
    w = jax.random.uniform(k_w, (out_features, in_features), dtype=jnp.float32,
                           minval=-bound, maxval=bound)

    prep = prepare_linear_bn_weight(w)                       # one-time prep (bf16 stream)
    out = jax.block_until_ready(linear_bn_leakyrelu(x, prep))
    assert out.shape == (batch, out_features)
    # Reference on the same bf16-rounded operands (kernel accumulates in f32, so the
    # only remaining difference is summation order / rsqrt rounding).
    ref = reference(_q(x), _q(w))
    assert jnp.allclose(out, ref, atol=5e-4, rtol=5e-4), "mismatch vs reference (small)"

    # Larger shape exercising multiple K tiles (accumulate + finalize) and 2 out_feature
    # tiles (v7x megacore path).
    b2, in2, out2 = 16, 640, 512
    x2 = jax.random.normal(k_x2, (b2, in2), dtype=jnp.float32)
    bound2 = 1.0 / (in2 ** 0.5)
    w2 = jax.random.uniform(k_w2, (out2, in2), dtype=jnp.float32,
                            minval=-bound2, maxval=bound2)
    prep2 = prepare_linear_bn_weight(w2, tk_pref=256)        # force a 5-step K reduction
    out2_v = jax.block_until_ready(linear_bn_leakyrelu(x2, prep2))
    assert out2_v.shape == (b2, out2)
    ref2 = reference(_q(x2), _q(w2))
    assert jnp.allclose(out2_v, ref2, atol=5e-4, rtol=5e-4), "mismatch vs reference (tiled)"

    # bf16 input/output smoke test (exercises the f32 scratch-accumulator path).
    out3 = jax.block_until_ready(linear_bn_leakyrelu(x2.astype(jnp.bfloat16), prep2))
    assert out3.shape == (b2, out2) and out3.dtype == jnp.bfloat16
    assert jnp.allclose(out3.astype(jnp.float32), ref2, atol=1e-2, rtol=5e-2), \
        "mismatch vs reference (bf16 out)"

    print("KERNEL_OK")
</pallas_src>

<mosaic_0001>
module attributes {stable_mosaic.version = 11 : i64} {
  func.func @_linear_bn_lrelu_kernel(%arg0: i32, %arg1: i32, %arg2: memref<8x128xbf16, #tpu.memory_space<vmem>>, %arg3: memref<128x128xbf16, #tpu.memory_space<vmem>>, %arg4: memref<8x128xf32, #tpu.memory_space<vmem>>) attributes {dimension_semantics = [#tpu.dimension_semantics<parallel>, #tpu.dimension_semantics<arbitrary>], iteration_bounds = array<i64: 1, 1>, scalar_prefetch = 0 : i64, scratch_operands = 0 : i64, tpu.core_type = #tpu.core_type<tc>, window_params = [{transform_indices = @transform_0, window_bounds = array<i64: 8, 128>}, {transform_indices = @transform_1, window_bounds = array<i64: 128, 128>}, {transform_indices = @transform_2, window_bounds = array<i64: 8, 128>}]} {
    %c0_i32 = arith.constant 0 : i32
    %0 = arith.cmpi eq, %arg1, %c0_i32 : i32
    %1 = arith.extui %0 : i1 to i32
    %c0_i32_0 = arith.constant 0 : i32
    %2 = arith.cmpi ne, %1, %c0_i32_0 : i32
    scf.if %2 {
      %cst_10 = arith.constant 0.000000e+00 : f32
      %12 = vector.broadcast %cst_10 : f32 to vector<8x128xf32>
      %c0_11 = arith.constant 0 : index
      %c0_12 = arith.constant 0 : index
      %13 = vector.load %arg4[%c0_11, %c0_12] : memref<8x128xf32, #tpu.memory_space<vmem>>, vector<8x128xf32>
      tpu.vector_store %arg4[%c0_11, %c0_12], %12 {strides = array<i32>} : memref<8x128xf32, #tpu.memory_space<vmem>>, vector<8x128xf32>,
    } else {
    }
    %c0 = arith.constant 0 : index
    %c0_1 = arith.constant 0 : index
    %3 = vector.load %arg4[%c0, %c0_1] : memref<8x128xf32, #tpu.memory_space<vmem>>, vector<8x128xf32>
    %c0_2 = arith.constant 0 : index
    %c0_3 = arith.constant 0 : index
    %4 = vector.load %arg2[%c0_2, %c0_3] : memref<8x128xbf16, #tpu.memory_space<vmem>>, vector<8x128xbf16>
    %c0_4 = arith.constant 0 : index
    %c0_5 = arith.constant 0 : index
    %5 = vector.load %arg3[%c0_4, %c0_5] : memref<128x128xbf16, #tpu.memory_space<vmem>>, vector<128x128xbf16>
    %cst = arith.constant dense<0.000000e+00> : vector<8x128xf32>
    %6 = tpu.matmul %4, %5, %cst {dimension_numbers = #tpu.dot_dimension_numbers<[1], [0], [0], [1], [0, 0, 1, 1], [], []>} : vector<8x128xbf16>, vector<128x128xbf16>, vector<8x128xf32> -> vector<8x128xf32>
    %7 = arith.addf %3, %6 : vector<8x128xf32>
    %c0_6 = arith.constant 0 : index
    %c0_7 = arith.constant 0 : index
    %8 = vector.load %arg4[%c0_6, %c0_7] : memref<8x128xf32, #tpu.memory_space<vmem>>, vector<8x128xf32>
    tpu.vector_store %arg4[%c0_6, %c0_7], %7 {strides = array<i32>} : memref<8x128xf32, #tpu.memory_space<vmem>>, vector<8x128xf32>,
    %c0_i32_8 = arith.constant 0 : i32
    %9 = arith.cmpi eq, %arg1, %c0_i32_8 : i32
    %10 = arith.extui %9 : i1 to i32
    %c0_i32_9 = arith.constant 0 : i32
    %11 = arith.cmpi ne, %10, %c0_i32_9 : i32
    scf.if %11 {
      %c0_10 = arith.constant 0 : index
      %c0_11 = arith.constant 0 : index
      %12 = vector.load %arg4[%c0_10, %c0_11] : memref<8x128xf32, #tpu.memory_space<vmem>>, vector<8x128xf32>
      %cst_12 = arith.constant dense<0.000000e+00> : vector<128xf32>
      %13 = vector.multi_reduction <add>, %12, %cst_12 [0] : vector<8x128xf32> to vector<128xf32>
      %14 = vector.shape_cast %13 : vector<128xf32> to vector<1x128xf32>
      %cst_13 = arith.constant 1.250000e-01 : f32
      %15 = vector.broadcast %cst_13 : f32 to vector<1x128xf32>
      %16 = arith.mulf %14, %15 : vector<1x128xf32>
      %17 = vector.broadcast %16 : vector<1x128xf32> to vector<8x128xf32>
      %18 = arith.subf %12, %17 : vector<8x128xf32>
      %19 = arith.mulf %18, %18 : vector<8x128xf32>
      %cst_14 = arith.constant dense<0.000000e+00> : vector<128xf32>
      %20 = vector.multi_reduction <add>, %19, %cst_14 [0] : vector<8x128xf32> to vector<128xf32>
      %21 = vector.shape_cast %20 : vector<128xf32> to vector<1x128xf32>
      %cst_15 = arith.constant 1.250000e-01 : f32
      %22 = vector.broadcast %cst_15 : f32 to vector<1x128xf32>
      %23 = arith.mulf %21, %22 : vector<1x128xf32>
      %cst_16 = arith.constant 9.99999974E-5 : f32
      %24 = vector.broadcast %cst_16 : f32 to vector<1x128xf32>
      %25 = arith.addf %23, %24 : vector<1x128xf32>
      %26 = math.rsqrt %25 : vector<1x128xf32>
      %27 = vector.broadcast %26 : vector<1x128xf32> to vector<8x128xf32>
      %28 = arith.mulf %18, %27 : vector<8x128xf32>
      %cst_17 = arith.constant 0.00999999977 : f32
      %29 = vector.broadcast %cst_17 : f32 to vector<8x128xf32>
      %30 = arith.mulf %29, %28 : vector<8x128xf32>
      %31 = arith.maximumf %28, %30 : vector<8x128xf32>
      %c0_18 = arith.constant 0 : index
      %c0_19 = arith.constant 0 : index
      %32 = vector.load %arg4[%c0_18, %c0_19] : memref<8x128xf32, #tpu.memory_space<vmem>>, vector<8x128xf32>
      tpu.vector_store %arg4[%c0_18, %c0_19], %31 {strides = array<i32>} : memref<8x128xf32, #tpu.memory_space<vmem>>, vector<8x128xf32>,
    } else {
    }
    return
  }
  func.func @transform_0(%arg0: i32, %arg1: i32) -> (i32, i32) {
    %c0_i32 = arith.constant 0 : i32
    %c0_i32_0 = arith.constant 0 : i32
    return %c0_i32, %arg1 : i32, i32
  }
  func.func @transform_1(%arg0: i32, %arg1: i32) -> (i32, i32) {
    %c0_i32 = arith.constant 0 : i32
    return %arg1, %arg0 : i32, i32
  }
  func.func @transform_2(%arg0: i32, %arg1: i32) -> (i32, i32) {
    %c0_i32 = arith.constant 0 : i32
    %c0_i32_0 = arith.constant 0 : i32
    return %c0_i32, %arg0 : i32, i32
  }
}

</mosaic_0001>

<bundles_post_ra>
// kernel: tpu_custom_call.1
= control target key start
LH: loop header
LB: loop body
LE: loop exit
PB: predicated region body
PF: predicated region fallthrough
CT: control target
= control target key end

     0   :  { %7 = vsyncpa [#allocation3], 0  ;;  %s385_s0 = inlined_call_operand.hbm [shape: bf16[8,128], index: 0, kind: input, shape index: {}]   ;;  %s386_s1 = inlined_call_operand.hbm [shape: bf16[128,128], index: 1, kind: input, shape index: {}]   ;;  %s387_s2 = inlined_call_operand.hbm [shape: f32[8,128], index: 2, kind: output, shape index: {}]  }
   0x1   :  { %8 = vsyncpa [#allocation6], 0 }
   0x2   :  { %9 = vsyncpa [#allocation4], 0  ;;  %s320_s9 = smov [#allocation2]   ;;  %s321_s11 = smov [#allocation5]  }
   0x3   :  { %s16_s10 = sshll.u32 %s320_s9, 4  ;;  %s25_s12 = sshll.u32 %s321_s11, 4  ;;  %s17_s10 = int_to_ptr.vmem [resolvable:$true] %s16_s10  ;;  %s342_s12 = int_to_ptr.vmem [resolvable:$true] %s25_s12 }
   0x4   :  { %s248_s15 = scalar_lea.hbm %s385_s0, 64 }
   0x5   :  { %p249_p0 = scmp.ne.s32.totalorder %s385_s0, %s248_s15  ;;  %p252_p1 = scmp.lt.u32.totalorder %s248_s15, %s385_s0 }
   0x7   :  { %p254_p2 = pnand %p252_p1, %p249_p0 }
   0x9   :  { %257 = shalt.err (!%p254_p2)
}
   0xa   :  { %s258_s20 = scalar_lea.vmem %s17_s10, 64  ;;  %p263_p4 = scmp.lt.s32.totalorder %s17_s10, %s17_s10 }
   0xb   :  { %p259_p3 = scmp.ne.s32.totalorder %s17_s10, %s258_s20  ;;  %p264_p5 = scmp.lt.s32.totalorder %s258_s20, %s258_s20 }
   0xd   :  { %p265_p6 = por %p264_p5, %p263_p4 }
   0xf   :  { %p266_p7 = pnand %p265_p6, %p259_p3 }
  0x11   :  { %269 = shalt.err (!%p266_p7)
}
  0x12   :  { %19 = dma.hbm_to_vmem [thread:$0]  %s385_s0, 64, %s17_s10, [#allocation3]  }
  0x13   :  { %s270_s25 = scalar_lea.hbm %s386_s1, 1024 }
  0x14   :  { %p271_p8 = scmp.ne.s32.totalorder %s386_s1, %s270_s25  ;;  %p274_p9 = scmp.lt.u32.totalorder %s270_s25, %s386_s1 }
  0x16   :  { %p276_p10 = pnand %p274_p9, %p271_p8 }
  0x18   :  { %279 = shalt.err (!%p276_p10)
}
  0x19   :  { %s280_s30 = scalar_lea.vmem %s342_s12, 1024  ;;  %p285_p12 = scmp.lt.s32.totalorder %s342_s12, %s342_s12 }
  0x1a   :  { %p281_p11 = scmp.ne.s32.totalorder %s342_s12, %s280_s30  ;;  %p286_p13 = scmp.lt.s32.totalorder %s280_s30, %s280_s30 }
  0x1c   :  { %p287_p0 = por %p286_p13, %p285_p12 }
  0x1e   :  { %p288_p1 = pnand %p287_p0, %p281_p11 }
  0x20   :  { %291 = shalt.err (!%p288_p1)
}
  0x21   :  { %s322_s0 = smov 64   ;;  %s323_s3 = smov 4  }
  0x22   :  { %31 = dma.hbm_to_vmem [thread:$0]  %s386_s1, 1024, %s342_s12, [#allocation6], %s322_s0, %s322_s0, %s323_s3  }
  0x23   :  { %314 = dma.done.wait [#allocation3], 64  }
  0x24   :  { %315 = vsyncadd [#allocation3], 4294967232 }
  0x25   :  { %316 = dma.done.wait [#allocation6], 1024  }
  0x26   :  { %317 = vsyncadd [#allocation6], 4294966272  ;;  %v324_v0 = vmov 0.0   ;;  %vm325_vm0 = vmmov 0   ;;  %v238_v1 = vld [vmem:[#allocation5] sm:$0xff]   ;;  %v239_v2 = vld [vmem:[#allocation5 + $0x8] sm:$0xff]  }
  0x27   :  { %211 = vmatprep.subr.bf16.mxu0 %v324_v0  ;;  %227 = vmatprep.mubr.msk.bf16.mxu0 %vm325_vm0, %v324_v0  ;;  %v240_v3 = vld [vmem:[#allocation5 + $0x10] sm:$0xff]   ;;  %v241_v4 = vld [vmem:[#allocation5 + $0x18] sm:$0xff]   ;;  %v242_v5 = vld [vmem:[#allocation5 + $0x20] sm:$0xff]   ;;  %s326_s1 = smov [#allocation7]  }
  0x28   :  { %212 = vmatpush3.bf16.msra.mxu0 %v238_v1  ;;  %v243_v6 = vld [vmem:[#allocation5 + $0x28] sm:$0xff]   ;;  %v244_v7 = vld [vmem:[#allocation5 + $0x30] sm:$0xff]   ;;  %v245_v8 = vld [vmem:[#allocation5 + $0x38] sm:$0xff]   ;;  %s184_s6 = sshll.u32 %s326_s1, 4  ;;  %s185_s6 = int_to_ptr.vmem [resolvable:$true] %s184_s6 }
  0x29   :  { %213 = vmatprep.subr.bf16.mxu0 %v324_v0  ;;  %v45_v9 = vld [vmem:[#allocation2] sm:$0xf]  ;;  %s292_s7 = scalar_lea.vmem %s185_s6, 128  ;;  %p297_p3 = scmp.lt.s32.totalorder %s185_s6, %s185_s6 }
  0x2a   :  { %p293_p2 = scmp.ne.s32.totalorder %s185_s6, %s292_s7  ;;  %p298_p4 = scmp.lt.s32.totalorder %s292_s7, %s292_s7 }
  0x2c   :  { %214 = vmatpush3.bf16.msra.mxu0 %v239_v2  ;;  %p299_p5 = por %p298_p4, %p297_p3 }
  0x2d   :  { %215 = vmatprep.subr.bf16.mxu0 %v324_v0 }
  0x2e   :  { %p300_p6 = pnand %p299_p5, %p293_p2 }
  0x30   :  { %216 = vmatpush3.bf16.msra.mxu0 %v240_v3 }
  0x31   :  { %217 = vmatprep.subr.bf16.mxu0 %v324_v0 }
  0x34   :  { %218 = vmatpush3.bf16.msra.mxu0 %v241_v4 }
  0x35   :  { %219 = vmatprep.subr.bf16.mxu0 %v324_v0 }
  0x38   :  { %220 = vmatpush3.bf16.msra.mxu0 %v242_v5 }
  0x39   :  { %221 = vmatprep.subr.bf16.mxu0 %v324_v0 }
  0x3c   :  { %222 = vmatpush3.bf16.msra.mxu0 %v243_v6 }
  0x3d   :  { %223 = vmatprep.subr.bf16.mxu0 %v324_v0 }
  0x40   :  { %224 = vmatpush3.bf16.msra.mxu0 %v244_v7 }
  0x41   :  { %225 = vmatprep.subr.bf16.mxu0 %v324_v0 }
  0x44   :  { %226 = vmatpush3.bf16.msra.mxu0 %v245_v8 }
  0x47   :  { %228 = vmatmul.mubr.bf16.vlgmr.msra.gmra.mrb[0].mxu0 %v45_v9 }
 0x11a   :  { %v144_v10 = vpop.f32.mrb[0].mxu0 }
 0x11b   :  { %v229_v11 = vpop.f32.mrb[1].mxu0  ;;  %v156_v14 = vrot.slane %v144_v10, 4 }
 0x11c   :  { %v147_v12 = vpop.f32.mrb[2].mxu0 }
 0x11d   :  { %v230_v13 = vpop.f32.mrb[3].mxu0  ;;  %v157_v15 = vadd.f32 %v156_v14, %v144_v10 }
 0x11f   :  { %v158_v16 = vrot.slane %v157_v15, 2 }
 0x121   :  { %v159_v17 = vadd.f32 %v158_v16, %v157_v15 }
 0x123   :  { %v160_v18 = vrot.slane %v159_v17, 1 }
 0x125   :  { %v161_v19 = vadd.f32 %v160_v18, %v159_v17 }
 0x127   :  { %v162_v20 = vmul.f32 0.125, %v161_v19 }
 0x129   :  { %v163_v21 = vsub.f32 %v144_v10, %v162_v20 }
 0x12b   :  { %v164_v22 = vmul.f32 %v163_v21, %v163_v21 }
 0x12d   :  { %v165_v23 = vrot.slane %v164_v22, 4 }
 0x12f   :  { %v166_v24 = vadd.f32 %v165_v23, %v164_v22 }
 0x131   :  { %v167_v25 = vrot.slane %v166_v24, 2 }
 0x133   :  { %v168_v26 = vadd.f32 %v167_v25, %v166_v24 }
 0x135   :  { %v169_v27 = vrot.slane %v168_v26, 1 }
 0x137   :  { %v170_v28 = vadd.f32 %v169_v27, %v168_v26 }
 0x139   :  { %v171_v29 = vmul.f32 0.125, %v170_v28 }
 0x13b   :  { %v172_v30 = vadd.f32 0.0001, %v171_v29 }
 0x13d   :  { %246 = vrsqrt.f32 %v172_v30 }
 0x147   :  { %v247_v31 = vpop.eup %246 }
 0x148   :  { %v174_v32 = vmul.f32 %v247_v31, %v163_v21 }
 0x14a   :  { %v175_v33 = vmul.f32 0.01, %v174_v32 }
 0x14c   :  { %v176_v34 = vmax.f32 %v174_v32, %v175_v33 }
 0x14e   :  { %177 = vst [vmem:[#allocation7] sm:$0xff] %v176_v34 }
 0x14f   :  { %303 = shalt.err (!%p300_p6)
}
 0x150   :  { %s304_s10 = scalar_lea.hbm %s387_s2, 128 }
 0x151   :  { %p305_p7 = scmp.ne.s32.totalorder %s387_s2, %s304_s10  ;;  %p308_p8 = scmp.lt.u32.totalorder %s304_s10, %s387_s2 }
 0x153   :  { %p310_p9 = pnand %p308_p8, %p305_p7 }
 0x155   :  { %313 = shalt.err (!%p310_p9)
}
 0x156   :  { %187 = dma.vmem_to_hbm [thread:$0]  %s185_s6, 128, %s387_s2, [#allocation4]  }
 0x157   :  { %318 = dma.done.wait [#allocation4], 128  }
 0x158   :  { %319 = vsyncadd [#allocation4], 4294967168 }
 0x159   :  { %191 = vsyncpa [#allocation3], 1 }
 0x15a   :  { %192 = vsyncpa [#allocation6], 1 }
 0x15b   :  { %193 = vsyncpa [#allocation4], 1 }

</bundles_post_ra>
